<compile_context>
chip_gen: v7x
topology: tpu7x:2x2x1
jax: 0.10.0
libtpu: 0.0.40
codegen_flags: <defaults>
</compile_context>

<pallas_src>
import functools

import jax
import jax.numpy as jnp
from jax.experimental import pallas as pl
from jax.experimental.pallas import tpu as pltpu


def fused_score_attention_kernel(x_ref, wqkv_ref, wproj_ref, bproj_ref, gamma_ref, beta_ref,
                                 o_ref, *, num_heads, head_dim, eps):
    """Per-batch fused attention + MaxPool1d(2,2) + LayerNorm.

    x_ref block: (1, 2N, D). Rows [0, N) = x stream, rows [N, 2N) = x_modal stream;
    within each stream rows are pre-permuted to [0,2,...,N-2,1,3,...,N-1].
    wqkv has 1/sqrt(head_dim) pre-folded into its q-columns.
    wproj / bproj have output columns pre-permuted to [evens | odds].
    o_ref block: (1, N, D) = the final pooled + normalized rows of this batch.
    """
    two_n = x_ref.shape[1]
    n = two_n // 2
    d = num_heads * head_dim
    half_d = d // 2
    half_n = n // 2

    x = x_ref[0]                                    # (2N, D), stays in input dtype (bf16-ok)
    wqkv = wqkv_ref[...]                            # (D, 3D), q-cols pre-scaled
    wproj = wproj_ref[...]                          # (D, D), columns = [even | odd]
    bproj = bproj_ref[...].astype(jnp.float32)      # (1, D), columns = [even | odd]
    gamma = gamma_ref[...].astype(jnp.float32)      # (1, D)
    beta = beta_ref[...].astype(jnp.float32)        # (1, D)

    # Single QKV projection for both streams: f32 accumulation on the MXU, working value
    # kept in the input dtype (no forced f32 upcast of MXU operands).
    qkv = jnp.dot(x, wqkv, preferred_element_type=jnp.float32).astype(x.dtype)   # (2N, 3D)

    pooled_streams = []
    for s in range(2):                              # s=0: x stream, s=1: x_modal stream
        base = s * n
        acc = jnp.zeros((n, d), dtype=jnp.float32)
        for h in range(num_heads):                  # static, unrolled head loop
            lo, hi = h * head_dim, (h + 1) * head_dim
            qh = qkv[base:base + n, lo:hi]                      # (N, dh), already scaled
            kh = qkv[base:base + n, d + lo:d + hi]              # (N, dh)
            vh = qkv[base:base + n, 2 * d + lo:2 * d + hi]      # (N, dh)
            sc = jnp.dot(qh, kh.T, preferred_element_type=jnp.float32)            # (N, N)
            sc = sc - jnp.max(sc, axis=-1, keepdims=True)
            p = jnp.exp(sc)                                     # unnormalized probs (EUP)
            l = jnp.sum(p, axis=-1, keepdims=True)              # (N, 1) row sums
            o_un = jnp.dot(p.astype(vh.dtype), vh,
                           preferred_element_type=jnp.float32)                    # (N, dh)
            # Normalize AFTER the P@V matmul: N*dh multiplies instead of N*N.
            oh = o_un * pl.reciprocal(l, approx=False)
            # Project this head straight through its rows of wproj: avoids the lane-axis
            # concatenation of narrow per-head outputs.
            acc = acc + jnp.dot(oh.astype(wproj.dtype), wproj[lo:hi, :],
                                preferred_element_type=jnp.float32)
        y = acc + bproj                                          # (N, D) f32, cols [even|odd]

        # MaxPool1d(kernel=2, stride=2) over the flattened row stream:
        #   column permutation -> pool pairs are the two contiguous lane halves of y,
        #   row permutation    -> final row pairs are the two contiguous sublane halves.
        m = jnp.maximum(y[:, :half_d], y[:, half_d:])                          # (N, D/2)
        pooled_streams.append(
            jnp.concatenate([m[:half_n, :], m[half_n:, :]], axis=-1))          # (N/2, D)

    # Fused LayerNorm over both streams + one full-block store.
    pooled = jnp.concatenate(pooled_streams, axis=0)                           # (N, D)
    mean = jnp.mean(pooled, axis=-1, keepdims=True)
    var = jnp.mean((pooled - mean) ** 2, axis=-1, keepdims=True)
    out = (pooled - mean) * jax.lax.rsqrt(var + eps) * gamma + beta
    o_ref[0] = out.astype(o_ref.dtype)


def score_attention_forward(x, x_modal, params, *, num_heads, eps=1e-5):
    B, N, D = x.shape
    assert x_modal.shape == (B, N, D)
    assert D % num_heads == 0 and N % 2 == 0 and D % 2 == 0
    head_dim = D // num_heads

    # Trace-time layout plumbing (tiny, one-off; lets the kernel use only contiguous slices
    # and removes the in-kernel score scaling).
    row_perm = jnp.concatenate([jnp.arange(0, N, 2), jnp.arange(1, N, 2)])
    col_perm = jnp.concatenate([jnp.arange(0, D, 2), jnp.arange(1, D, 2)])

    xin = jnp.concatenate([x[:, row_perm, :], x_modal[:, row_perm, :]], axis=1)  # (B, 2N, D)

    qk_scale = head_dim ** -0.5
    scale_vec = jnp.concatenate([
        jnp.full((D,), qk_scale, dtype=params["wqkv"].dtype),
        jnp.ones((2 * D,), dtype=params["wqkv"].dtype)])
    wqkv = params["wqkv"] * scale_vec[None, :]         # (D, 3D), scale folded into q-cols
    wproj = params["wproj"][:, col_perm]               # (D, D), columns permuted
    bproj = params["bproj"][col_perm].reshape(1, D)
    gamma = params["gamma"].reshape(1, D)
    beta = params["beta"].reshape(1, D)

    kernel = functools.partial(fused_score_attention_kernel,
                               num_heads=num_heads, head_dim=head_dim, eps=eps)

    return pl.pallas_call(
        kernel,
        out_shape=jax.ShapeDtypeStruct((B, N, D), x.dtype),
        grid=(B,),
        in_specs=[
            pl.BlockSpec((1, 2 * N, D), lambda i: (i, 0, 0)),
            pl.BlockSpec((D, 3 * D), lambda i: (0, 0)),   # weights: constant index map,
            pl.BlockSpec((D, D), lambda i: (0, 0)),       # stay resident across the grid
            pl.BlockSpec((1, D), lambda i: (0, 0)),
            pl.BlockSpec((1, D), lambda i: (0, 0)),
            pl.BlockSpec((1, D), lambda i: (0, 0)),
        ],
        out_specs=pl.BlockSpec((1, N, D), lambda i: (i, 0, 0)),
        compiler_params=pltpu.CompilerParams(
            dimension_semantics=("parallel",),
            vmem_limit_bytes=32 * 1024 * 1024,  # explicit budget; safe on v5e/v6e/v7x
        ),
    )(xin, wqkv, wproj, bproj, gamma, beta)


def reference_forward(x, x_modal, params, *, num_heads):
    """Pure-JAX mirror of the PyTorch module (eval mode)."""
    B, N, D = x.shape
    head_dim = D // num_heads

    def attn(xx):
        qkv = xx @ params["wqkv"]                                      # (B, N, 3D)
        qkv = qkv.reshape(B, N, 3, num_heads, head_dim).transpose(2, 0, 3, 1, 4)
        q, k, v = qkv[0], qkv[1], qkv[2]
        s = jnp.einsum("bhnd,bhmd->bhnm", q, k) * (head_dim ** -0.5)
        p = jax.nn.softmax(s, axis=-1)
        o = jnp.einsum("bhnm,bhmd->bhnd", p, v)
        o = o.transpose(0, 2, 1, 3).reshape(B, N, D)
        return o @ params["wproj"] + params["bproj"]

    y1 = attn(x)
    y2 = attn(x_modal)
    cat = jnp.stack([y1.reshape(B, -1), y2.reshape(B, -1)], axis=1)    # (B, 2, N*D)
    pooled = jnp.max(cat.reshape(B, 2, -1, 2), axis=-1)                # MaxPool1d(2, 2)
    m = pooled.reshape(B, N, D)
    mean = m.mean(-1, keepdims=True)
    var = ((m - mean) ** 2).mean(-1, keepdims=True)
    xn = (m - mean) / jnp.sqrt(var + 1e-5)
    return xn * params["gamma"] + params["beta"]


if __name__ == "__main__":
    B, N, D, H = 2, 8, 32, 4        # batch, seq, embed_dim, num_heads

    key = jax.random.PRNGKey(0)
    kx, kxm, kq, kp, kb, kg, kbeta = jax.random.split(key, 7)

    x = jax.random.normal(kx, (B, N, D), dtype=jnp.float32)
    x_modal = jax.random.normal(kxm, (B, N, D), dtype=jnp.float32)

    params = {
        "wqkv": 0.1 * jax.random.normal(kq, (D, 3 * D), dtype=jnp.float32),
        "wproj": 0.1 * jax.random.normal(kp, (D, D), dtype=jnp.float32),
        "bproj": 0.05 * jax.random.normal(kb, (D,), dtype=jnp.float32),
        "gamma": 1.0 + 0.1 * jax.random.normal(kg, (D,), dtype=jnp.float32),
        "beta": 0.1 * jax.random.normal(kbeta, (D,), dtype=jnp.float32),
    }

    out = score_attention_forward(x, x_modal, params, num_heads=H)
    out = jax.block_until_ready(out)

    ref = reference_forward(x, x_modal, params, num_heads=H)
    assert out.shape == (B, N, D)
    assert jnp.allclose(out, ref, atol=1e-4, rtol=1e-4), (
        f"max abs err = {jnp.max(jnp.abs(out - ref))}")

    print("KERNEL_OK")
</pallas_src>

<mosaic_0001>
module attributes {stable_mosaic.version = 11 : i64} {
  func.func @fused_score_attention_kernel(%arg0: i32, %arg1: memref<1x16x32xf32, #tpu.memory_space<vmem>>, %arg2: memref<32x96xf32, #tpu.memory_space<vmem>>, %arg3: memref<32x32xf32, #tpu.memory_space<vmem>>, %arg4: memref<1x32xf32, #tpu.memory_space<vmem>>, %arg5: memref<1x32xf32, #tpu.memory_space<vmem>>, %arg6: memref<1x32xf32, #tpu.memory_space<vmem>>, %arg7: memref<1x8x32xf32, #tpu.memory_space<vmem>>) attributes {dimension_semantics = [#tpu.dimension_semantics<parallel>], iteration_bounds = array<i64: 2>, scalar_prefetch = 0 : i64, scratch_operands = 0 : i64, tpu.core_type = #tpu.core_type<tc>, window_params = [{transform_indices = @transform_0, window_bounds = array<i64: 1, 16, 32>}, {pipeline_mode = #tpu.pipeline_mode<synchronous>, transform_indices = @transform_1, window_bounds = array<i64: 32, 96>}, {pipeline_mode = #tpu.pipeline_mode<synchronous>, transform_indices = @transform_2, window_bounds = array<i64: 32, 32>}, {pipeline_mode = #tpu.pipeline_mode<synchronous>, transform_indices = @transform_3, window_bounds = array<i64: 1, 32>}, {pipeline_mode = #tpu.pipeline_mode<synchronous>, transform_indices = @transform_4, window_bounds = array<i64: 1, 32>}, {pipeline_mode = #tpu.pipeline_mode<synchronous>, transform_indices = @transform_5, window_bounds = array<i64: 1, 32>}, {transform_indices = @transform_6, window_bounds = array<i64: 1, 8, 32>}]} {
    %c0 = arith.constant 0 : index
    %c0_0 = arith.constant 0 : index
    %c0_1 = arith.constant 0 : index
    %0 = vector.load %arg1[%c0, %c0_0, %c0_1] : memref<1x16x32xf32, #tpu.memory_space<vmem>>, vector<1x16x32xf32>
    %1 = vector.shape_cast %0 : vector<1x16x32xf32> to vector<16x32xf32>
    %c0_2 = arith.constant 0 : index
    %c0_3 = arith.constant 0 : index
    %2 = vector.load %arg2[%c0_2, %c0_3] : memref<32x96xf32, #tpu.memory_space<vmem>>, vector<32x96xf32>
    %c0_4 = arith.constant 0 : index
    %c0_5 = arith.constant 0 : index
    %3 = vector.load %arg3[%c0_4, %c0_5] : memref<32x32xf32, #tpu.memory_space<vmem>>, vector<32x32xf32>
    %c0_6 = arith.constant 0 : index
    %c0_7 = arith.constant 0 : index
    %4 = vector.load %arg4[%c0_6, %c0_7] : memref<1x32xf32, #tpu.memory_space<vmem>>, vector<1x32xf32>
    %c0_8 = arith.constant 0 : index
    %c0_9 = arith.constant 0 : index
    %5 = vector.load %arg5[%c0_8, %c0_9] : memref<1x32xf32, #tpu.memory_space<vmem>>, vector<1x32xf32>
    %c0_10 = arith.constant 0 : index
    %c0_11 = arith.constant 0 : index
    %6 = vector.load %arg6[%c0_10, %c0_11] : memref<1x32xf32, #tpu.memory_space<vmem>>, vector<1x32xf32>
    %cst = arith.constant dense<0.000000e+00> : vector<16x96xf32>
    %7 = tpu.matmul %1, %2, %cst {dimension_numbers = #tpu.dot_dimension_numbers<[1], [0], [0], [1], [0, 0, 1, 1], [], []>} : vector<16x32xf32>, vector<32x96xf32>, vector<16x96xf32> -> vector<16x96xf32>
    %cst_12 = arith.constant 0.000000e+00 : f32
    %8 = vector.broadcast %cst_12 : f32 to vector<8x32xf32>
    %9 = vector.extract_strided_slice %7 {offsets = [0, 0], sizes = [8, 8], strides = [1, 1]} : vector<16x96xf32> to vector<8x8xf32>
    %10 = vector.extract_strided_slice %7 {offsets = [0, 32], sizes = [8, 8], strides = [1, 1]} : vector<16x96xf32> to vector<8x8xf32>
    %11 = vector.extract_strided_slice %7 {offsets = [0, 64], sizes = [8, 8], strides = [1, 1]} : vector<16x96xf32> to vector<8x8xf32>
    %12 = tpu.transpose %10, [1, 0] : vector<8x8xf32> -> vector<8x8xf32>
    %cst_13 = arith.constant dense<0.000000e+00> : vector<8x8xf32>
    %13 = tpu.matmul %9, %12, %cst_13 {dimension_numbers = #tpu.dot_dimension_numbers<[1], [0], [0], [1], [0, 0, 1, 1], [], []>} : vector<8x8xf32>, vector<8x8xf32>, vector<8x8xf32> -> vector<8x8xf32>
    %cst_14 = arith.constant dense<0xFF800000> : vector<8xf32>
    %14 = vector.multi_reduction <maximumf>, %13, %cst_14 [1] : vector<8x8xf32> to vector<8xf32>
    %15 = vector.shape_cast %14 : vector<8xf32> to vector<8x1xf32>
    %16 = vector.broadcast %15 : vector<8x1xf32> to vector<8x8xf32>
    %17 = arith.subf %13, %16 : vector<8x8xf32>
    %18 = math.exp %17 : vector<8x8xf32>
    %cst_15 = arith.constant dense<0.000000e+00> : vector<8xf32>
    %19 = vector.multi_reduction <add>, %18, %cst_15 [1] : vector<8x8xf32> to vector<8xf32>
    %20 = vector.shape_cast %19 : vector<8xf32> to vector<8x1xf32>
    %cst_16 = arith.constant dense<0.000000e+00> : vector<8x8xf32>
    %21 = tpu.matmul %18, %11, %cst_16 {dimension_numbers = #tpu.dot_dimension_numbers<[1], [0], [0], [1], [0, 0, 1, 1], [], []>} : vector<8x8xf32>, vector<8x8xf32>, vector<8x8xf32> -> vector<8x8xf32>
    %22 = tpu.reciprocal %20 : vector<8x1xf32> -> vector<8x1xf32>
    %23 = vector.broadcast %22 : vector<8x1xf32> to vector<8x8xf32>
    %24 = arith.mulf %21, %23 : vector<8x8xf32>
    %25 = vector.extract_strided_slice %3 {offsets = [0, 0], sizes = [8, 32], strides = [1, 1]} : vector<32x32xf32> to vector<8x32xf32>
    %cst_17 = arith.constant dense<0.000000e+00> : vector<8x32xf32>
    %26 = tpu.matmul %24, %25, %cst_17 {dimension_numbers = #tpu.dot_dimension_numbers<[1], [0], [0], [1], [0, 0, 1, 1], [], []>} : vector<8x8xf32>, vector<8x32xf32>, vector<8x32xf32> -> vector<8x32xf32>
    %27 = arith.addf %8, %26 : vector<8x32xf32>
    %28 = vector.extract_strided_slice %7 {offsets = [0, 8], sizes = [8, 8], strides = [1, 1]} : vector<16x96xf32> to vector<8x8xf32>
    %29 = vector.extract_strided_slice %7 {offsets = [0, 40], sizes = [8, 8], strides = [1, 1]} : vector<16x96xf32> to vector<8x8xf32>
    %30 = vector.extract_strided_slice %7 {offsets = [0, 72], sizes = [8, 8], strides = [1, 1]} : vector<16x96xf32> to vector<8x8xf32>
    %31 = tpu.transpose %29, [1, 0] : vector<8x8xf32> -> vector<8x8xf32>
    %cst_18 = arith.constant dense<0.000000e+00> : vector<8x8xf32>
    %32 = tpu.matmul %28, %31, %cst_18 {dimension_numbers = #tpu.dot_dimension_numbers<[1], [0], [0], [1], [0, 0, 1, 1], [], []>} : vector<8x8xf32>, vector<8x8xf32>, vector<8x8xf32> -> vector<8x8xf32>
    %cst_19 = arith.constant dense<0xFF800000> : vector<8xf32>
    %33 = vector.multi_reduction <maximumf>, %32, %cst_19 [1] : vector<8x8xf32> to vector<8xf32>
    %34 = vector.shape_cast %33 : vector<8xf32> to vector<8x1xf32>
    %35 = vector.broadcast %34 : vector<8x1xf32> to vector<8x8xf32>
    %36 = arith.subf %32, %35 : vector<8x8xf32>
    %37 = math.exp %36 : vector<8x8xf32>
    %cst_20 = arith.constant dense<0.000000e+00> : vector<8xf32>
    %38 = vector.multi_reduction <add>, %37, %cst_20 [1] : vector<8x8xf32> to vector<8xf32>
    %39 = vector.shape_cast %38 : vector<8xf32> to vector<8x1xf32>
    %cst_21 = arith.constant dense<0.000000e+00> : vector<8x8xf32>
    %40 = tpu.matmul %37, %30, %cst_21 {dimension_numbers = #tpu.dot_dimension_numbers<[1], [0], [0], [1], [0, 0, 1, 1], [], []>} : vector<8x8xf32>, vector<8x8xf32>, vector<8x8xf32> -> vector<8x8xf32>
    %41 = tpu.reciprocal %39 : vector<8x1xf32> -> vector<8x1xf32>
    %42 = vector.broadcast %41 : vector<8x1xf32> to vector<8x8xf32>
    %43 = arith.mulf %40, %42 : vector<8x8xf32>
    %44 = vector.extract_strided_slice %3 {offsets = [8, 0], sizes = [8, 32], strides = [1, 1]} : vector<32x32xf32> to vector<8x32xf32>
    %cst_22 = arith.constant dense<0.000000e+00> : vector<8x32xf32>
    %45 = tpu.matmul %43, %44, %cst_22 {dimension_numbers = #tpu.dot_dimension_numbers<[1], [0], [0], [1], [0, 0, 1, 1], [], []>} : vector<8x8xf32>, vector<8x32xf32>, vector<8x32xf32> -> vector<8x32xf32>
    %46 = arith.addf %27, %45 : vector<8x32xf32>
    %47 = vector.extract_strided_slice %7 {offsets = [0, 16], sizes = [8, 8], strides = [1, 1]} : vector<16x96xf32> to vector<8x8xf32>
    %48 = vector.extract_strided_slice %7 {offsets = [0, 48], sizes = [8, 8], strides = [1, 1]} : vector<16x96xf32> to vector<8x8xf32>
    %49 = vector.extract_strided_slice %7 {offsets = [0, 80], sizes = [8, 8], strides = [1, 1]} : vector<16x96xf32> to vector<8x8xf32>
    %50 = tpu.transpose %48, [1, 0] : vector<8x8xf32> -> vector<8x8xf32>
    %cst_23 = arith.constant dense<0.000000e+00> : vector<8x8xf32>
    %51 = tpu.matmul %47, %50, %cst_23 {dimension_numbers = #tpu.dot_dimension_numbers<[1], [0], [0], [1], [0, 0, 1, 1], [], []>} : vector<8x8xf32>, vector<8x8xf32>, vector<8x8xf32> -> vector<8x8xf32>
    %cst_24 = arith.constant dense<0xFF800000> : vector<8xf32>
    %52 = vector.multi_reduction <maximumf>, %51, %cst_24 [1] : vector<8x8xf32> to vector<8xf32>
    %53 = vector.shape_cast %52 : vector<8xf32> to vector<8x1xf32>
    %54 = vector.broadcast %53 : vector<8x1xf32> to vector<8x8xf32>
    %55 = arith.subf %51, %54 : vector<8x8xf32>
    %56 = math.exp %55 : vector<8x8xf32>
    %cst_25 = arith.constant dense<0.000000e+00> : vector<8xf32>
    %57 = vector.multi_reduction <add>, %56, %cst_25 [1] : vector<8x8xf32> to vector<8xf32>
    %58 = vector.shape_cast %57 : vector<8xf32> to vector<8x1xf32>
    %cst_26 = arith.constant dense<0.000000e+00> : vector<8x8xf32>
    %59 = tpu.matmul %56, %49, %cst_26 {dimension_numbers = #tpu.dot_dimension_numbers<[1], [0], [0], [1], [0, 0, 1, 1], [], []>} : vector<8x8xf32>, vector<8x8xf32>, vector<8x8xf32> -> vector<8x8xf32>
    %60 = tpu.reciprocal %58 : vector<8x1xf32> -> vector<8x1xf32>
    %61 = vector.broadcast %60 : vector<8x1xf32> to vector<8x8xf32>
    %62 = arith.mulf %59, %61 : vector<8x8xf32>
    %63 = vector.extract_strided_slice %3 {offsets = [16, 0], sizes = [8, 32], strides = [1, 1]} : vector<32x32xf32> to vector<8x32xf32>
    %cst_27 = arith.constant dense<0.000000e+00> : vector<8x32xf32>
    %64 = tpu.matmul %62, %63, %cst_27 {dimension_numbers = #tpu.dot_dimension_numbers<[1], [0], [0], [1], [0, 0, 1, 1], [], []>} : vector<8x8xf32>, vector<8x32xf32>, vector<8x32xf32> -> vector<8x32xf32>
    %65 = arith.addf %46, %64 : vector<8x32xf32>
    %66 = vector.extract_strided_slice %7 {offsets = [0, 24], sizes = [8, 8], strides = [1, 1]} : vector<16x96xf32> to vector<8x8xf32>
    %67 = vector.extract_strided_slice %7 {offsets = [0, 56], sizes = [8, 8], strides = [1, 1]} : vector<16x96xf32> to vector<8x8xf32>
    %68 = vector.extract_strided_slice %7 {offsets = [0, 88], sizes = [8, 8], strides = [1, 1]} : vector<16x96xf32> to vector<8x8xf32>
    %69 = tpu.transpose %67, [1, 0] : vector<8x8xf32> -> vector<8x8xf32>
    %cst_28 = arith.constant dense<0.000000e+00> : vector<8x8xf32>
    %70 = tpu.matmul %66, %69, %cst_28 {dimension_numbers = #tpu.dot_dimension_numbers<[1], [0], [0], [1], [0, 0, 1, 1], [], []>} : vector<8x8xf32>, vector<8x8xf32>, vector<8x8xf32> -> vector<8x8xf32>
    %cst_29 = arith.constant dense<0xFF800000> : vector<8xf32>
    %71 = vector.multi_reduction <maximumf>, %70, %cst_29 [1] : vector<8x8xf32> to vector<8xf32>
    %72 = vector.shape_cast %71 : vector<8xf32> to vector<8x1xf32>
    %73 = vector.broadcast %72 : vector<8x1xf32> to vector<8x8xf32>
    %74 = arith.subf %70, %73 : vector<8x8xf32>
    %75 = math.exp %74 : vector<8x8xf32>
    %cst_30 = arith.constant dense<0.000000e+00> : vector<8xf32>
    %76 = vector.multi_reduction <add>, %75, %cst_30 [1] : vector<8x8xf32> to vector<8xf32>
    %77 = vector.shape_cast %76 : vector<8xf32> to vector<8x1xf32>
    %cst_31 = arith.constant dense<0.000000e+00> : vector<8x8xf32>
    %78 = tpu.matmul %75, %68, %cst_31 {dimension_numbers = #tpu.dot_dimension_numbers<[1], [0], [0], [1], [0, 0, 1, 1], [], []>} : vector<8x8xf32>, vector<8x8xf32>, vector<8x8xf32> -> vector<8x8xf32>
    %79 = tpu.reciprocal %77 : vector<8x1xf32> -> vector<8x1xf32>
    %80 = vector.broadcast %79 : vector<8x1xf32> to vector<8x8xf32>
    %81 = arith.mulf %78, %80 : vector<8x8xf32>
    %82 = vector.extract_strided_slice %3 {offsets = [24, 0], sizes = [8, 32], strides = [1, 1]} : vector<32x32xf32> to vector<8x32xf32>
    %cst_32 = arith.constant dense<0.000000e+00> : vector<8x32xf32>
    %83 = tpu.matmul %81, %82, %cst_32 {dimension_numbers = #tpu.dot_dimension_numbers<[1], [0], [0], [1], [0, 0, 1, 1], [], []>} : vector<8x8xf32>, vector<8x32xf32>, vector<8x32xf32> -> vector<8x32xf32>
    %84 = arith.addf %65, %83 : vector<8x32xf32>
    %85 = vector.broadcast %4 : vector<1x32xf32> to vector<8x32xf32>
    %86 = arith.addf %84, %85 : vector<8x32xf32>
    %87 = vector.extract_strided_slice %86 {offsets = [0, 0], sizes = [8, 16], strides = [1, 1]} : vector<8x32xf32> to vector<8x16xf32>
    %88 = vector.extract_strided_slice %86 {offsets = [0, 16], sizes = [8, 16], strides = [1, 1]} : vector<8x32xf32> to vector<8x16xf32>
    %89 = arith.maximumf %87, %88 : vector<8x16xf32>
    %90 = vector.extract_strided_slice %89 {offsets = [0, 0], sizes = [4, 16], strides = [1, 1]} : vector<8x16xf32> to vector<4x16xf32>
    %91 = vector.extract_strided_slice %89 {offsets = [4, 0], sizes = [4, 16], strides = [1, 1]} : vector<8x16xf32> to vector<4x16xf32>
    %92 = tpu.concatenate %90, %91 in 1 : vector<4x16xf32>, vector<4x16xf32> -> vector<4x32xf32>
    %cst_33 = arith.constant 0.000000e+00 : f32
    %93 = vector.broadcast %cst_33 : f32 to vector<8x32xf32>
    %94 = vector.extract_strided_slice %7 {offsets = [8, 0], sizes = [8, 8], strides = [1, 1]} : vector<16x96xf32> to vector<8x8xf32>
    %95 = vector.extract_strided_slice %7 {offsets = [8, 32], sizes = [8, 8], strides = [1, 1]} : vector<16x96xf32> to vector<8x8xf32>
    %96 = vector.extract_strided_slice %7 {offsets = [8, 64], sizes = [8, 8], strides = [1, 1]} : vector<16x96xf32> to vector<8x8xf32>
    %97 = tpu.transpose %95, [1, 0] : vector<8x8xf32> -> vector<8x8xf32>
    %cst_34 = arith.constant dense<0.000000e+00> : vector<8x8xf32>
    %98 = tpu.matmul %94, %97, %cst_34 {dimension_numbers = #tpu.dot_dimension_numbers<[1], [0], [0], [1], [0, 0, 1, 1], [], []>} : vector<8x8xf32>, vector<8x8xf32>, vector<8x8xf32> -> vector<8x8xf32>
    %cst_35 = arith.constant dense<0xFF800000> : vector<8xf32>
    %99 = vector.multi_reduction <maximumf>, %98, %cst_35 [1] : vector<8x8xf32> to vector<8xf32>
    %100 = vector.shape_cast %99 : vector<8xf32> to vector<8x1xf32>
    %101 = vector.broadcast %100 : vector<8x1xf32> to vector<8x8xf32>
    %102 = arith.subf %98, %101 : vector<8x8xf32>
    %103 = math.exp %102 : vector<8x8xf32>
    %cst_36 = arith.constant dense<0.000000e+00> : vector<8xf32>
    %104 = vector.multi_reduction <add>, %103, %cst_36 [1] : vector<8x8xf32> to vector<8xf32>
    %105 = vector.shape_cast %104 : vector<8xf32> to vector<8x1xf32>
    %cst_37 = arith.constant dense<0.000000e+00> : vector<8x8xf32>
    %106 = tpu.matmul %103, %96, %cst_37 {dimension_numbers = #tpu.dot_dimension_numbers<[1], [0], [0], [1], [0, 0, 1, 1], [], []>} : vector<8x8xf32>, vector<8x8xf32>, vector<8x8xf32> -> vector<8x8xf32>
    %107 = tpu.reciprocal %105 : vector<8x1xf32> -> vector<8x1xf32>
    %108 = vector.broadcast %107 : vector<8x1xf32> to vector<8x8xf32>
    %109 = arith.mulf %106, %108 : vector<8x8xf32>
    %110 = vector.extract_strided_slice %3 {offsets = [0, 0], sizes = [8, 32], strides = [1, 1]} : vector<32x32xf32> to vector<8x32xf32>
    %cst_38 = arith.constant dense<0.000000e+00> : vector<8x32xf32>
    %111 = tpu.matmul %109, %110, %cst_38 {dimension_numbers = #tpu.dot_dimension_numbers<[1], [0], [0], [1], [0, 0, 1, 1], [], []>} : vector<8x8xf32>, vector<8x32xf32>, vector<8x32xf32> -> vector<8x32xf32>
    %112 = arith.addf %93, %111 : vector<8x32xf32>
    %113 = vector.extract_strided_slice %7 {offsets = [8, 8], sizes = [8, 8], strides = [1, 1]} : vector<16x96xf32> to vector<8x8xf32>
    %114 = vector.extract_strided_slice %7 {offsets = [8, 40], sizes = [8, 8], strides = [1, 1]} : vector<16x96xf32> to vector<8x8xf32>
    %115 = vector.extract_strided_slice %7 {offsets = [8, 72], sizes = [8, 8], strides = [1, 1]} : vector<16x96xf32> to vector<8x8xf32>
    %116 = tpu.transpose %114, [1, 0] : vector<8x8xf32> -> vector<8x8xf32>
    %cst_39 = arith.constant dense<0.000000e+00> : vector<8x8xf32>
    %117 = tpu.matmul %113, %116, %cst_39 {dimension_numbers = #tpu.dot_dimension_numbers<[1], [0], [0], [1], [0, 0, 1, 1], [], []>} : vector<8x8xf32>, vector<8x8xf32>, vector<8x8xf32> -> vector<8x8xf32>
    %cst_40 = arith.constant dense<0xFF800000> : vector<8xf32>
    %118 = vector.multi_reduction <maximumf>, %117, %cst_40 [1] : vector<8x8xf32> to vector<8xf32>
    %119 = vector.shape_cast %118 : vector<8xf32> to vector<8x1xf32>
    %120 = vector.broadcast %119 : vector<8x1xf32> to vector<8x8xf32>
    %121 = arith.subf %117, %120 : vector<8x8xf32>
    %122 = math.exp %121 : vector<8x8xf32>
    %cst_41 = arith.constant dense<0.000000e+00> : vector<8xf32>
    %123 = vector.multi_reduction <add>, %122, %cst_41 [1] : vector<8x8xf32> to vector<8xf32>
    %124 = vector.shape_cast %123 : vector<8xf32> to vector<8x1xf32>
    %cst_42 = arith.constant dense<0.000000e+00> : vector<8x8xf32>
    %125 = tpu.matmul %122, %115, %cst_42 {dimension_numbers = #tpu.dot_dimension_numbers<[1], [0], [0], [1], [0, 0, 1, 1], [], []>} : vector<8x8xf32>, vector<8x8xf32>, vector<8x8xf32> -> vector<8x8xf32>
    %126 = tpu.reciprocal %124 : vector<8x1xf32> -> vector<8x1xf32>
    %127 = vector.broadcast %126 : vector<8x1xf32> to vector<8x8xf32>
    %128 = arith.mulf %125, %127 : vector<8x8xf32>
    %129 = vector.extract_strided_slice %3 {offsets = [8, 0], sizes = [8, 32], strides = [1, 1]} : vector<32x32xf32> to vector<8x32xf32>
    %cst_43 = arith.constant dense<0.000000e+00> : vector<8x32xf32>
    %130 = tpu.matmul %128, %129, %cst_43 {dimension_numbers = #tpu.dot_dimension_numbers<[1], [0], [0], [1], [0, 0, 1, 1], [], []>} : vector<8x8xf32>, vector<8x32xf32>, vector<8x32xf32> -> vector<8x32xf32>
    %131 = arith.addf %112, %130 : vector<8x32xf32>
    %132 = vector.extract_strided_slice %7 {offsets = [8, 16], sizes = [8, 8], strides = [1, 1]} : vector<16x96xf32> to vector<8x8xf32>
    %133 = vector.extract_strided_slice %7 {offsets = [8, 48], sizes = [8, 8], strides = [1, 1]} : vector<16x96xf32> to vector<8x8xf32>
    %134 = vector.extract_strided_slice %7 {offsets = [8, 80], sizes = [8, 8], strides = [1, 1]} : vector<16x96xf32> to vector<8x8xf32>
    %135 = tpu.transpose %133, [1, 0] : vector<8x8xf32> -> vector<8x8xf32>
    %cst_44 = arith.constant dense<0.000000e+00> : vector<8x8xf32>
    %136 = tpu.matmul %132, %135, %cst_44 {dimension_numbers = #tpu.dot_dimension_numbers<[1], [0], [0], [1], [0, 0, 1, 1], [], []>} : vector<8x8xf32>, vector<8x8xf32>, vector<8x8xf32> -> vector<8x8xf32>
    %cst_45 = arith.constant dense<0xFF800000> : vector<8xf32>
    %137 = vector.multi_reduction <maximumf>, %136, %cst_45 [1] : vector<8x8xf32> to vector<8xf32>
    %138 = vector.shape_cast %137 : vector<8xf32> to vector<8x1xf32>
    %139 = vector.broadcast %138 : vector<8x1xf32> to vector<8x8xf32>
    %140 = arith.subf %136, %139 : vector<8x8xf32>
    %141 = math.exp %140 : vector<8x8xf32>
    %cst_46 = arith.constant dense<0.000000e+00> : vector<8xf32>
    %142 = vector.multi_reduction <add>, %141, %cst_46 [1] : vector<8x8xf32> to vector<8xf32>
    %143 = vector.shape_cast %142 : vector<8xf32> to vector<8x1xf32>
    %cst_47 = arith.constant dense<0.000000e+00> : vector<8x8xf32>
    %144 = tpu.matmul %141, %134, %cst_47 {dimension_numbers = #tpu.dot_dimension_numbers<[1], [0], [0], [1], [0, 0, 1, 1], [], []>} : vector<8x8xf32>, vector<8x8xf32>, vector<8x8xf32> -> vector<8x8xf32>
    %145 = tpu.reciprocal %143 : vector<8x1xf32> -> vector<8x1xf32>
    %146 = vector.broadcast %145 : vector<8x1xf32> to vector<8x8xf32>
    %147 = arith.mulf %144, %146 : vector<8x8xf32>
    %148 = vector.extract_strided_slice %3 {offsets = [16, 0], sizes = [8, 32], strides = [1, 1]} : vector<32x32xf32> to vector<8x32xf32>
    %cst_48 = arith.constant dense<0.000000e+00> : vector<8x32xf32>
    %149 = tpu.matmul %147, %148, %cst_48 {dimension_numbers = #tpu.dot_dimension_numbers<[1], [0], [0], [1], [0, 0, 1, 1], [], []>} : vector<8x8xf32>, vector<8x32xf32>, vector<8x32xf32> -> vector<8x32xf32>
    %150 = arith.addf %131, %149 : vector<8x32xf32>
    %151 = vector.extract_strided_slice %7 {offsets = [8, 24], sizes = [8, 8], strides = [1, 1]} : vector<16x96xf32> to vector<8x8xf32>
    %152 = vector.extract_strided_slice %7 {offsets = [8, 56], sizes = [8, 8], strides = [1, 1]} : vector<16x96xf32> to vector<8x8xf32>
    %153 = vector.extract_strided_slice %7 {offsets = [8, 88], sizes = [8, 8], strides = [1, 1]} : vector<16x96xf32> to vector<8x8xf32>
    %154 = tpu.transpose %152, [1, 0] : vector<8x8xf32> -> vector<8x8xf32>
    %cst_49 = arith.constant dense<0.000000e+00> : vector<8x8xf32>
    %155 = tpu.matmul %151, %154, %cst_49 {dimension_numbers = #tpu.dot_dimension_numbers<[1], [0], [0], [1], [0, 0, 1, 1], [], []>} : vector<8x8xf32>, vector<8x8xf32>, vector<8x8xf32> -> vector<8x8xf32>
    %cst_50 = arith.constant dense<0xFF800000> : vector<8xf32>
    %156 = vector.multi_reduction <maximumf>, %155, %cst_50 [1] : vector<8x8xf32> to vector<8xf32>
    %157 = vector.shape_cast %156 : vector<8xf32> to vector<8x1xf32>
    %158 = vector.broadcast %157 : vector<8x1xf32> to vector<8x8xf32>
    %159 = arith.subf %155, %158 : vector<8x8xf32>
    %160 = math.exp %159 : vector<8x8xf32>
    %cst_51 = arith.constant dense<0.000000e+00> : vector<8xf32>
    %161 = vector.multi_reduction <add>, %160, %cst_51 [1] : vector<8x8xf32> to vector<8xf32>
    %162 = vector.shape_cast %161 : vector<8xf32> to vector<8x1xf32>
    %cst_52 = arith.constant dense<0.000000e+00> : vector<8x8xf32>
    %163 = tpu.matmul %160, %153, %cst_52 {dimension_numbers = #tpu.dot_dimension_numbers<[1], [0], [0], [1], [0, 0, 1, 1], [], []>} : vector<8x8xf32>, vector<8x8xf32>, vector<8x8xf32> -> vector<8x8xf32>
    %164 = tpu.reciprocal %162 : vector<8x1xf32> -> vector<8x1xf32>
    %165 = vector.broadcast %164 : vector<8x1xf32> to vector<8x8xf32>
    %166 = arith.mulf %163, %165 : vector<8x8xf32>
    %167 = vector.extract_strided_slice %3 {offsets = [24, 0], sizes = [8, 32], strides = [1, 1]} : vector<32x32xf32> to vector<8x32xf32>
    %cst_53 = arith.constant dense<0.000000e+00> : vector<8x32xf32>
    %168 = tpu.matmul %166, %167, %cst_53 {dimension_numbers = #tpu.dot_dimension_numbers<[1], [0], [0], [1], [0, 0, 1, 1], [], []>} : vector<8x8xf32>, vector<8x32xf32>, vector<8x32xf32> -> vector<8x32xf32>
    %169 = arith.addf %150, %168 : vector<8x32xf32>
    %170 = vector.broadcast %4 : vector<1x32xf32> to vector<8x32xf32>
    %171 = arith.addf %169, %170 : vector<8x32xf32>
    %172 = vector.extract_strided_slice %171 {offsets = [0, 0], sizes = [8, 16], strides = [1, 1]} : vector<8x32xf32> to vector<8x16xf32>
    %173 = vector.extract_strided_slice %171 {offsets = [0, 16], sizes = [8, 16], strides = [1, 1]} : vector<8x32xf32> to vector<8x16xf32>
    %174 = arith.maximumf %172, %173 : vector<8x16xf32>
    %175 = vector.extract_strided_slice %174 {offsets = [0, 0], sizes = [4, 16], strides = [1, 1]} : vector<8x16xf32> to vector<4x16xf32>
    %176 = vector.extract_strided_slice %174 {offsets = [4, 0], sizes = [4, 16], strides = [1, 1]} : vector<8x16xf32> to vector<4x16xf32>
    %177 = tpu.concatenate %175, %176 in 1 : vector<4x16xf32>, vector<4x16xf32> -> vector<4x32xf32>
    %178 = tpu.concatenate %92, %177 in 0 : vector<4x32xf32>, vector<4x32xf32> -> vector<8x32xf32>
    %cst_54 = arith.constant dense<0.000000e+00> : vector<8xf32>
    %179 = vector.multi_reduction <add>, %178, %cst_54 [1] : vector<8x32xf32> to vector<8xf32>
    %180 = vector.shape_cast %179 : vector<8xf32> to vector<8x1xf32>
    %cst_55 = arith.constant 3.200000e+01 : f32
    %181 = vector.broadcast %cst_55 : f32 to vector<8x1xf32>
    %182 = arith.divf %180, %181 : vector<8x1xf32>
    %183 = vector.broadcast %182 : vector<8x1xf32> to vector<8x32xf32>
    %184 = arith.subf %178, %183 : vector<8x32xf32>
    %185 = arith.mulf %184, %184 : vector<8x32xf32>
    %cst_56 = arith.constant dense<0.000000e+00> : vector<8xf32>
    %186 = vector.multi_reduction <add>, %185, %cst_56 [1] : vector<8x32xf32> to vector<8xf32>
    %187 = vector.shape_cast %186 : vector<8xf32> to vector<8x1xf32>
    %cst_57 = arith.constant 3.200000e+01 : f32
    %188 = vector.broadcast %cst_57 : f32 to vector<8x1xf32>
    %189 = arith.divf %187, %188 : vector<8x1xf32>
    %190 = vector.broadcast %182 : vector<8x1xf32> to vector<8x32xf32>
    %191 = arith.subf %178, %190 : vector<8x32xf32>
    %cst_58 = arith.constant 9.99999974E-6 : f32
    %192 = vector.broadcast %cst_58 : f32 to vector<8x1xf32>
    %193 = arith.addf %189, %192 : vector<8x1xf32>
    %194 = math.rsqrt %193 : vector<8x1xf32>
    %195 = vector.broadcast %194 : vector<8x1xf32> to vector<8x32xf32>
    %196 = arith.mulf %191, %195 : vector<8x32xf32>
    %197 = vector.broadcast %5 : vector<1x32xf32> to vector<8x32xf32>
    %198 = arith.mulf %196, %197 : vector<8x32xf32>
    %199 = vector.broadcast %6 : vector<1x32xf32> to vector<8x32xf32>
    %200 = arith.addf %198, %199 : vector<8x32xf32>
    %c0_59 = arith.constant 0 : index
    %c0_60 = arith.constant 0 : index
    %c0_61 = arith.constant 0 : index
    %201 = vector.load %arg7[%c0_59, %c0_60, %c0_61] : memref<1x8x32xf32, #tpu.memory_space<vmem>>, vector<1x8x32xf32>
    %202 = vector.shape_cast %201 : vector<1x8x32xf32> to vector<8x32xf32>
    %203 = vector.shape_cast %200 : vector<8x32xf32> to vector<1x8x32xf32>
    tpu.vector_store %arg7[%c0_59, %c0_60, %c0_61], %203 {strides = array<i32>} : memref<1x8x32xf32, #tpu.memory_space<vmem>>, vector<1x8x32xf32>,
    return
  }
  func.func @transform_0(%arg0: i32) -> (i32, i32, i32) {
    %c0_i32 = arith.constant 0 : i32
    %c0_i32_0 = arith.constant 0 : i32
    %c0_i32_1 = arith.constant 0 : i32
    return %arg0, %c0_i32, %c0_i32_0 : i32, i32, i32
  }
  func.func @transform_1(%arg0: i32) -> (i32, i32) {
    %c0_i32 = arith.constant 0 : i32
    %c0_i32_0 = arith.constant 0 : i32
    %c0_i32_1 = arith.constant 0 : i32
    return %c0_i32, %c0_i32_0 : i32, i32
  }
  func.func @transform_2(%arg0: i32) -> (i32, i32) {
    %c0_i32 = arith.constant 0 : i32
    %c0_i32_0 = arith.constant 0 : i32
    %c0_i32_1 = arith.constant 0 : i32
    return %c0_i32, %c0_i32_0 : i32, i32
  }
  func.func @transform_3(%arg0: i32) -> (i32, i32) {
    %c0_i32 = arith.constant 0 : i32
    %c0_i32_0 = arith.constant 0 : i32
    %c0_i32_1 = arith.constant 0 : i32
    return %c0_i32, %c0_i32_0 : i32, i32
  }
  func.func @transform_4(%arg0: i32) -> (i32, i32) {
    %c0_i32 = arith.constant 0 : i32
    %c0_i32_0 = arith.constant 0 : i32
    %c0_i32_1 = arith.constant 0 : i32
    return %c0_i32, %c0_i32_0 : i32, i32
  }
  func.func @transform_5(%arg0: i32) -> (i32, i32) {
    %c0_i32 = arith.constant 0 : i32
    %c0_i32_0 = arith.constant 0 : i32
    %c0_i32_1 = arith.constant 0 : i32
    return %c0_i32, %c0_i32_0 : i32, i32
  }
  func.func @transform_6(%arg0: i32) -> (i32, i32, i32) {
    %c0_i32 = arith.constant 0 : i32
    %c0_i32_0 = arith.constant 0 : i32
    %c0_i32_1 = arith.constant 0 : i32
    return %arg0, %c0_i32, %c0_i32_0 : i32, i32, i32
  }
}

</mosaic_0001>

<bundles_post_ra>
// kernel: tpu_custom_call.1
= control target key start
LH: loop header
LB: loop body
LE: loop exit
PB: predicated region body
PF: predicated region fallthrough
CT: control target
= control target key end

     0   :  { %11 = vsyncpa [#allocation3], 0  ;;  %s3494_s0 = inlined_call_operand.hbm [shape: f32[2,16,32], index: 0, kind: input, shape index: {}]   ;;  %s3495_s1 = inlined_call_operand.hbm [shape: f32[32,96], index: 1, kind: input, shape index: {}]   ;;  %s3496_s2 = inlined_call_operand.hbm [shape: f32[32,32], index: 2, kind: input, shape index: {}]   ;;  %s3497_s3 = inlined_call_operand.vmem [shape: f32[1,32], index: 3, kind: input, shape index: {}]   ;;  %s3498_s4 = inlined_call_operand.vmem [shape: f32[1,32], index: 4, kind: input, shape index: {}]   ;;  %s3499_s5 = inlined_call_operand.vmem [shape: f32[1,32], index: 5, kind: input, shape index: {}]   ;;  %s3500_s6 = inlined_call_operand.hbm [shape: f32[2,8,32], index: 6, kind: output, shape index: {}]  }
   0x1   :  { %13 = vsyncpa [#allocation3 + $0x1], 0 }
   0x2   :  { %14 = vsyncpa [#allocation6], 0 }
   0x3   :  { %15 = vsyncpa [#allocation4], 0 }
   0x4   :  { %17 = vsyncpa [#allocation4 + $0x1], 0  ;;  %s3047_s21 = smov 0   ;;  %s3049_s22 = smov 0  }
   0x5   :  { %s3051_s23 = smov 0   ;;  %s3053_s24 = smov 0  }
   0x6 LB: > { %s3068_s25 = sadd.s32 4294967295, %s2990_s24   ;;  %s2469_s26 = sadd.s32 4294967294, %s2990_s24   ;;  %s2990_s24 = sphi %s3053_s24, %s3520_s24   ;;  %s2986_s23 = sphi %s3051_s23, %s3519_s23   ;;  %s2982_s22 = sphi %s3049_s22, %s3518_s22   ;;  %s2978_s21 = sphi %s3047_s21, %s3517_s21  }
   0x7   : > { %p43_p0 = scmp.ne.s32.totalorder %s2982_s22, %s2978_s21  ;;  %p3501_p1 = scmp.eq.s32.totalorder %s3068_s25, 0 }
   0x8   : > { %p178_p3 = scmp.eq.s32.totalorder %s2469_s26, 1  ;;  %p2470_p5 = scmp.ge.s32.totalorder %s2990_s24, 1 }
   0x9   : > { %p3077_p4 = por %p3501_p1, %p43_p0  ;;  %p185_p7 = scmp.lt.s32.totalorder %s2990_s24, 3 }
   0xa   : > { %p3082_p6 = por %p178_p3, %p43_p0  ;;  %s2992_s30 = smov [#allocation5]  }
   0xb   : > { %s3504_s27 = scalar_select %p3077_p4, 1, 0 }
   0xc   : > { %s3505_s28 = scalar_select %p3082_p6, 1, 0 }
   0xd   : > { %p3087_p8 = pnand %p2470_p5, %p185_p7  ;;  %s197_s7 = sshll.u32 %s2992_s30, 4  ;;  %s3091_s7 = int_to_ptr.vmem [resolvable:$true] %s197_s7 }
   0xe   : > { %s2993_s9 = smov [#allocation7]   ;;  %s2834_s13 = scalar_lea.hbm %s3495_s1, 512 }
   0xf   : > { %p2729_p9 = pneg %p3087_p8  ;;  %s210_s10 = sshll.u32 %s2993_s9, 4  ;;  %s3102_s10 = int_to_ptr.vmem [resolvable:$true] %s210_s10 }
  0x10   : > { %p2835_p12 = scmp.ne.s32.totalorder %s3495_s1, %s2834_s13  ;;  %p2841_p5 = scmp.lt.u32.totalorder %s2834_s13, %s3495_s1 }
  0x11   : > { %p3098_p11 = pnand %p2729_p9, %p3501_p1 }
  0x13   : > { %p2836_p13 = pneg %p3098_p11 }
  0x15   : > { %p2837_p0 = pnand %p2836_p13, %p2835_p12 }
  0x17   : > { %p2838_p3 = pneg %p2837_p0 }
  0x19   : > { %p2843_p7 = pnand %p2841_p5, %p2838_p3 }
  0x1b   : > { %2846 = shalt.err (!%p2843_p7)
}
  0x1c   : > { %s2847_s18 = scalar_lea.vmem %s3091_s7, 512  ;;  %p2855_p2 = scmp.lt.s32.totalorder %s3091_s7, %s3091_s7 }
  0x1d   : > { %p2848_p9 = scmp.ne.s32.totalorder %s3091_s7, %s2847_s18  ;;  %p2856_p12 = scmp.lt.s32.totalorder %s2847_s18, %s2847_s18 }
  0x1f   : > { %p2850_p10 = pnand %p2848_p9, %p2836_p13  ;;  %p2857_p0 = por %p2856_p12, %p2855_p2 }
  0x21   : > { %p2851_p1 = pneg %p2850_p10 }
  0x23   : > { %p2858_p6 = pnand %p2857_p0, %p2851_p1 }
  0x25   : > { %2861 = shalt.err (!%p2858_p6)
}
  0x26   : > { %s2994_s19 = smov 128   ;;  %s2995_s20 = smov 8  }
  0x27   : > { %2732 = dma.hbm_to_vmem [thread:$0]  (!%p3098_p11), %s3495_s1, 512, %s3091_s7, [#allocation6], %s2994_s19, %s2994_s19, %s2995_s20  }
  0x28   : > { %s2862_s12 = scalar_lea.hbm %s3496_s2, 512 }
  0x29   : > { %p2863_p1 = scmp.ne.s32.totalorder %s3496_s2, %s2862_s12  ;;  %p2869_p10 = scmp.lt.u32.totalorder %s2862_s12, %s3496_s2 }
  0x2b   : > { %p2865_p2 = pnand %p2863_p1, %p2836_p13 }
  0x2d   : > { %p2866_p6 = pneg %p2865_p2 }
  0x2f   : > { %p2871_p3 = pnand %p2869_p10, %p2866_p6 }
  0x31   : > { %2874 = shalt.err (!%p2871_p3)
}
  0x32   : > { %s2875_s7 = scalar_lea.vmem %s3102_s10, 512  ;;  %p2883_p12 = scmp.lt.s32.totalorder %s3102_s10, %s3102_s10 }
  0x33   : > { %p2876_p5 = scmp.ne.s32.totalorder %s3102_s10, %s2875_s7  ;;  %p2884_p0 = scmp.lt.s32.totalorder %s2875_s7, %s2875_s7 }
  0x35   : > { %p2878_p7 = pnand %p2876_p5, %p2836_p13  ;;  %p2885_p1 = por %p2884_p0, %p2883_p12 }
  0x37   : > { %p2879_p9 = pneg %p2878_p7 }
  0x39   : > { %p2886_p2 = pnand %p2885_p1, %p2879_p9 }
  0x3b   : > { %2889 = shalt.err (!%p2886_p2)
}
  0x3c   : > { %2735 = dma.hbm_to_vmem [thread:$0]  (!%p3098_p11), %s3496_s2, 512, %s3102_s10, [#allocation6], %s2994_s19, %s2994_s19, %s2995_s20  }
  0x3d   : > { %s3163_s8 = sadd.s32 1, %s2990_s24   ;;  %s30_s26 = sadd.s32 1, %s2986_s23 }
  0x3e   : > { %s27_s30 = ssub.s32 %s2990_s24, %s3163_s8  ;;  %p37_p13 = scmp.ne.s32.totalorder %s2986_s23, %s2982_s22 }
  0x3f   : > { %p28_p6 = scmp.eq.s32.totalorder %s27_s30, 0  ;;  %p38_p10 = scmp.eq.s32.totalorder %s2990_s24, 0 }
  0x40   : > { %p3508_p3 = scmp.eq.s32.totalorder %s3068_s25, 1  ;;  %p2746_p7 = scmp.lt.s32.totalorder %s2990_s24, 2 }
  0x41   : > { %s3179_s11 = scalar_select %p28_p6, %s2986_s23, %s30_s26  }
  0x42   : > { %p3173_p5 = por %p3508_p3, %p37_p13  ;;  %p39_p9 = por %p38_p10, %p37_p13 }
  0x43   : > { %s233_s12 = sand.u32 1, %s2986_s23   ;;  %s2523_s10 = sshll.u32 %s2990_s24, 8 }
  0x44   : > { %s3509_s9 = scalar_select %p3173_p5, 1, 0 }
  0x45   : > { %s2474_s13 = sshll.u32 %s233_s12, 4  ;;  %s3186_s16 = scalar_lea.hbm %s3494_s0, %s2523_s10 }
  0x46   : > { %s237_s7 = scalar_lea.vmem [#allocation2], %s2474_s13  ;;  %p3190_p11 = pnand %p2746_p7, %p39_p9 }
  0x47   : > { %s244_s17 = sshll.u32 %s237_s7, 4  ;;  %s3194_s26 = scalar_lea.sflag [#allocation3], %s233_s12  ;;  %s3188_s17 = int_to_ptr.vmem [resolvable:$true] %s244_s17 }
  0x48   : > { %s2890_s30 = scalar_lea.hbm %s3186_s16, 256  ;;  %p2892_p0 = pneg %p3190_p11 }
  0x49   : > { %p2891_p12 = scmp.ne.s32.totalorder %s3186_s16, %s2890_s30  ;;  %s2895_s14 = scalar_lea.hbm %s3494_s0, 512 }
  0x4a   : > { %p2896_p13 = scmp.lt.u32.totalorder %s3186_s16, %s3494_s0  ;;  %p2897_p6 = scmp.lt.u32.totalorder %s2895_s14, %s2890_s30 }
  0x4b   : > { %p2893_p1 = pnand %p2892_p0, %p2891_p12  ;;  %p2899_p3 = scmp.lt.u32.totalorder %s2890_s30, %s3186_s16 }
  0x4c   : > { %p2898_p10 = por %p2897_p6, %p2896_p13 }
  0x4d   : > { %p2894_p2 = pneg %p2893_p1 }
  0x4e   : > { %p2900_p7 = por %p2899_p3, %p2898_p10 }
  0x50   : > { %p2901_p9 = pnand %p2900_p7, %p2894_p2 }
  0x52   : > { %2904 = shalt.err (!%p2901_p9)
}
  0x53   : > { %s2905_s12 = scalar_lea.vmem %s3188_s17, 256  ;;  %s2996_s13 = smov [#allocation2]  }
  0x54   : > { %p2906_p12 = scmp.ne.s32.totalorder %s3188_s17, %s2905_s12  ;;  %s2910_s10 = sshll.u32 %s2996_s13, 4  ;;  %s2911_s10 = int_to_ptr.vmem [resolvable:$false] %s2910_s10 }
  0x55   : > { %s2912_s15 = scalar_lea.vmem %s2911_s10, 512  ;;  %p2913_p4 = scmp.lt.s32.totalorder %s3188_s17, %s2911_s10 }
  0x56   : > { %p2908_p1 = pnand %p2906_p12, %p2892_p0  ;;  %p2914_p13 = scmp.lt.s32.totalorder %s2912_s15, %s2905_s12 }
  0x58   : > { %p2909_p5 = pneg %p2908_p1  ;;  %p2915_p6 = por %p2914_p13, %p2913_p4 }
  0x5a   : > { %p2916_p10 = pnand %p2915_p6, %p2909_p5 }
  0x5c   : > { %2919 = shalt.err (!%p2916_p10)
}
  0x5d   : > { %2739 = dma.hbm_to_vmem [thread:$0]  (!%p3190_p11), %s3186_s16, 256, %s3188_s17, %s3194_s26, %s2994_s19, %s2994_s19, %s2995_s20  }
  0x5e   : > { %256 = sbr.rel (%p3087_p8) target bundleno = 4120 (0x1018), region = 44  ;;  %s3228_s30 = sand.u32 (!%p3087_p8), 1, %s2982_s22  }
  0x5f   : > { %s2478_s14 = sshll.u32 (!%p3087_p8), %s3228_s30, 4  ;;  %s259_s7 = scalar_lea.sflag (!%p3087_p8), [#allocation3], %s3228_s30 }
  0x60   : > { %s262_s12 = scalar_lea.vmem (!%p3087_p8), [#allocation2], %s2478_s14  ;;  %p3511_p4 = scmp.ne.s32.totalorder (!%p3087_p8), %s3504_s27, 0 }
  0x65   : > { %2965 = dma.done.wait (%p3511_p4), %s259_s7, 256  }
  0x66   : > { %2967 = vsyncadd (%p3511_p4), %s259_s7, 4294967040  ;;  %p3512_p5 = scmp.eq.s32.totalorder %s3068_s25, 0 }
  0x68   : > { %2969 = dma.done.wait (%p3512_p5), [#allocation6], 1024   ;;  %p3513_p11 = pmov %p3512_p5 }
  0x69   : > { %vm312_vm0 = vcmask 261120   ;;  %v301_v0 = vld [vmem:[#allocation5] sm:$0xff]  ;;  %v302_v1 = vld [vmem:[#allocation5 + $0x8] sm:$0xff]  ;;  %v303_v2 = vld [vmem:[#allocation5 + $0x10] sm:$0xff]  ;;  %v2997_v8 = vmov 0.0   ;;  %vm2998_vm1 = vmmov 0  }
  0x6a   : > { %2971 = vsyncadd (%p3513_p11), [#allocation6], 4294966272  ;;  %v2709_v3 = vpack.c.bf16 %v302_v1, %v301_v0  ;;  %v304_v4 = vld [vmem:[#allocation5 + $0x18] sm:$0xff]  ;;  %v299_v5 = vld [vmem:[%s262_s12] sm:$0xff]  ;;  %2589 = vmatprep.subr.mxu1 %v2997_v8  ;;  %2591 = vmatprep.mubr.msk.f32.mxu1 %vm2998_vm1, %v2997_v8  ;;  %s2999_s27 = smov 120   ;;  %s3000_s29 = smov 96  }
  0x6b   : > { %v2713_v6 = vpack.c.bf16 %v304_v4, %v303_v2  ;;  %2586 = vmatprep.mubr.msk.f32.mxu0 %vm312_vm0, %v299_v5  ;;  %v300_v7 = vld [vmem:[%s262_s12 + $0x8] sm:$0xff]  ;;  %s3001_s19 = smov 88   ;;  %vm397_vm2 = vcmask 64512   ;;  %s3002_s20 = smov 56   ;;  %v3296_v33 = vld [vmem:[#allocation7] sm:$0xff]  ;;  %v3331_v62 = vld [vmem:[#allocation7 + $0x10] sm:$0xff] }
  0x6c   : > { %2710 = vmatprep.subr.bf16.mxu0 %v2709_v3  ;;  %s3003_s16 = smov 64   ;;  %s3004_s17 = smov 80   ;;  %v3293_v32 = vld [vmem:[#allocation7 + $0x8] sm:$0xff]  ;;  %vm1365_vm3 = vcmask 130048   ;;  %vm2335_vm4 = vcmask 1043456  }
  0x6d   : > { %2712 = vmatpush3.bf16.msra.mxu0 %v2709_v3  ;;  %s3005_s18 = smov 112   ;;  %s3006_s26 = smov 48  }
  0x6e   : > { %2714 = vmatprep.subr.bf16.mxu0 %v2713_v6  ;;  %s3007_s13 = smov 72   ;;  %s3008_s10 = smov 104  }
  0x6f   : > { %s3009_s15 = smov 40   ;;  %s3010_s12 = smov 16  }
  0x70   : > { %s2367_s14 = scalar_lea.sflag [#allocation4], %s3228_s30  ;;  %p3514_p0 = scmp.ne.s32.totalorder %s3509_s9, 0 }
  0x71   : > { %2716 = vmatpush3.bf16.msra.mxu0 %v2713_v6 }
  0x72   : > { %2599 = vmatprep.subr.mxu0 %v2997_v8 }
  0x74   : > { %2587 = vmatmul.mubr.msk.f32.vlgmr.msra.gmra.mrb[0].mxu0 %vm312_vm0, %v300_v7 }
  0x75   : > { %2601 = vmatprep.mubr.msk.f32.mxu0 %vm2998_vm1, %v2997_v8 }
 0x147   : > { %v3248_v9 = vpop.f32.mrb[0].mxu0 }
 0x148   : > { %v3250_v10 = vpop.f32.mrb[1].mxu0 }
 0x149   : > { %559 = vrot.lane.b32.xlu1 %v3250_v10, %s2999_s27  ;;  %395 = vrot.lane.b32.xlu0 %v3250_v10, %s3000_s29 }
 0x14d   : > { %561 = vrot.lane.b32.xlu0 %v3250_v10, %s3001_s19 }
 0x1bb   : > { %v396_v11 = vpop.permute.xlu0 %395  ;;  %v560_v13 = vpop.permute.xlu1 %559 }
 0x1bc   : > { %2590 = vmatpush3.xpose.msk.msra.mxu1 %vm397_vm2, %v396_v11 }
 0x1bd   : > { %2594 = vmatprep.subr.mxu1 %v2997_v8 }
 0x1bf   : > { %2592 = vmatmul.mubr.msk.f32.vlgmr.msra.gmra.mrb[0].mxu1 %vm397_vm2, %v3250_v10  ;;  %v562_v12 = vpop.permute.xlu0 %561 }
 0x1c0   : > { %2600 = vmatpush3.xpose.msk.msra.mxu0 %vm397_vm2, %v562_v12  ;;  %2596 = vmatprep.mubr.msk.f32.mxu1 %vm2998_vm1, %v2997_v8 }
 0x1c1   : > { %2609 = vmatprep.subr.mxu0 %v2997_v8 }
 0x1c3   : > { %2602 = vmatmul.mubr.msk.f32.vlgmr.msra.gmra.mrb[2].mxu0 %vm397_vm2, %v560_v13 }
 0x1c4   : > { %2611 = vmatprep.mubr.msk.f32.mxu0 %vm2998_vm1, %v2997_v8  ;;  %2610 = vmatpush3.msra.mxu0 %v3293_v32 }
 0x1c5   : > { %2619 = vmatprep.subr.mxu0 %v2997_v8 }
 0x292   : > { %v468_v14 = vpop.f32.mrb[0].mxu1 }
 0x293   : > { %v2593_v15 = vpop.f32.mrb[1].mxu1  ;;  %v472_v16 = vsel %vm397_vm2, %v468_v14, -inf }
 0x294   : > { %473 = vmax.xlane.f32.xlu1 %v472_v16 }
 0x296   : > { %v633_v17 = vpop.f32.mrb[2].mxu0 }
 0x297   : > { %v2603_v18 = vpop.f32.mrb[3].mxu0  ;;  %v637_v19 = vsel %vm397_vm2, %v633_v17, -inf }
 0x298   : > { %638 = vmax.xlane.f32.xlu0 %v637_v19 }
 0x2a5   : > { %646 = vrot.lane.b32.xlu1 %v3250_v10, %s3002_s20 }
 0x2ae   : > { %481 = vrot.lane.b32.xlu0 %v3250_v10, %s3003_s16 }
 0x2b2   : > { %872 = vrot.lane.b32.xlu0 %v3250_v10, %s3004_s17 }
 0x2b6   : > { %870 = vrot.lane.b32.xlu0 %v3250_v10, %s3005_s18 }
 0x321   : > { %v474_v20 = vpop.xlane.xlu1 %473 }
 0x322   : > { %v475_v21 = vsub.f32 %v468_v14, %v474_v20 }
 0x324   : > { %v476_v22 = vmul.f32 1.442695, %v475_v21  ;;  %v3364_v21 = vld [vmem:[#allocation7 + $0x18] sm:$0xff] }
 0x325   : > { %v639_v23 = vpop.xlane.xlu0 %638  ;;  %v647_v28 = vpop.permute.xlu1 %646 }
 0x326   : > { %2800 = vpow2.f32 %v476_v22  ;;  %v640_v24 = vsub.f32 %v633_v17, %v639_v23 }
 0x328   : > { %v641_v25 = vmul.f32 1.442695, %v640_v24 }
 0x329   : > { %v482_v26 = vpop.permute.xlu0 %481 }
 0x32a   : > { %2802 = vpow2.f32 %v641_v25  ;;  %2595 = vmatpush3.msra.mxu1 %v482_v26 }
 0x32b   : > { %2604 = vmatprep.subr.mxu1 %v2997_v8 }
 0x32d   : > { %v873_v34 = vpop.permute.xlu0 %872 }
 0x330   : > { %v2801_v27 = vpop.eup %2800 }
 0x331   : > { %2597 = vmatmul.mubr.msk.f32.vlgmr.msra.gmra.mrb[2].mxu1 %vm397_vm2, %v2801_v27  ;;  %v478_v29 = vsel %vm397_vm2, %v2801_v27, 0.0  ;;  %v871_v35 = vpop.permute.xlu0 %870 }
 0x332   : > { %2605 = vmatpush3.msra.mxu1 %v647_v28  ;;  %479 = vadd.xlane.f32.xlu0 %v478_v29 }
 0x333   : > { %2606 = vmatprep.mubr.msk.f32.mxu1 %vm2998_vm1, %v2997_v8  ;;  %2614 = vmatprep.subr.mxu1 %v2997_v8 }
 0x334   : > { %v2803_v30 = vpop.eup %2802 }
 0x335   : > { %2607 = vmatmul.mubr.msk.f32.vlgmr.msra.gmra.mrb[4].mxu1 %vm397_vm2, %v2803_v30  ;;  %v643_v31 = vsel %vm397_vm2, %v2803_v30, 0.0 }
 0x336   : > { %644 = vadd.xlane.f32.xlu1 %v643_v31  ;;  %2616 = vmatprep.mubr.msk.f32.mxu1 %vm2998_vm1, %v2997_v8 }
 0x337   : > { %2615 = vmatpush3.msra.mxu1 %v3296_v33 }
 0x338   : > { %2624 = vmatprep.subr.mxu1 %v2997_v8 }
 0x347   : > { %957 = vrot.lane.b32.xlu1 %v3250_v10, %s3006_s26 }
 0x348   : > { %1111 = vrot.lane.b32.xlu0 %v3250_v10, %s3007_s13 }
 0x3bf   : > { %v480_v36 = vpop.xlane.xlu0 %479 }
 0x3c0   : > { %2804 = vrcp.f32 %v480_v36 }
 0x3c3   : > { %v645_v37 = vpop.xlane.xlu1 %644  ;;  %v1112_v59 = vpop.permute.xlu0 %1111 }
 0x3c4   : > { %2806 = vrcp.f32 %v645_v37 }
 0x3c7   : > { %v958_v42 = vpop.permute.xlu1 %957 }
 0x3ca   : > { %v2805_v38 = vpop.eup %2804 }
 0x3ce   : > { %v2807_v43 = vpop.eup %2806 }
 0x404   : > { %v553_v39 = vpop.f32.mrb[2].mxu1 }
 0x405   : > { %v558_v40 = vmul.f32 %v2805_v38, %v553_v39  ;;  %v2598_v41 = vpop.f32.mrb[3].mxu1 }
 0x407   : > { %2617 = vmatmul.mubr.msk.f32.vlgmr.msra.gmra.mrb[6].mxu1 %vm397_vm2, %v558_v40 }
 0x408   : > { %2625 = vmatpush3.msra.mxu1 %v958_v42  ;;  %v718_v44 = vpop.f32.mrb[4].mxu1  ;;  %2626 = vmatprep.mubr.msk.f32.mxu1 %vm2998_vm1, %v2997_v8 }
 0x409   : > { %v723_v45 = vmul.f32 %v2807_v43, %v718_v44  ;;  %v2608_v46 = vpop.f32.mrb[5].mxu1  ;;  %2634 = vmatprep.subr.mxu1 %v2997_v8 }
 0x40b   : > { %2612 = vmatmul.mubr.msk.f32.vlgmr.msra.gmra.mrb[4].mxu0 %vm397_vm2, %v723_v45 }
 0x40c   : > { %2620 = vmatpush3.xpose.msk.msra.mxu0 %vm397_vm2, %v873_v34  ;;  %2621 = vmatprep.mubr.msk.f32.mxu0 %vm2998_vm1, %v2997_v8 }
 0x40d   : > { %2629 = vmatprep.subr.mxu0 %v2997_v8 }
 0x40f   : > { %2622 = vmatmul.mubr.msk.f32.vlgmr.msra.gmra.mrb[6].mxu0 %vm397_vm2, %v871_v35 }
 0x410   : > { %2631 = vmatprep.mubr.msk.f32.mxu0 %vm2998_vm1, %v2997_v8  ;;  %2630 = vmatpush3.msra.mxu0 %v3331_v62 }
 0x411   : > { %2639 = vmatprep.subr.mxu0 %v2997_v8 }
 0x4da   : > { %v866_v47 = vpop.f32.mrb[6].mxu1 }
 0x4db   : > { %v2618_v48 = vpop.f32.mrb[7].mxu1 }
 0x4de   : > { %v793_v49 = vpop.f32.mrb[4].mxu0 }
 0x4df   : > { %v3313_v50 = vadd.f32 %v866_v47, %v793_v49  ;;  %v2613_v51 = vpop.f32.mrb[5].mxu0 }
 0x4e2   : > { %v944_v52 = vpop.f32.mrb[6].mxu0 }
 0x4e3   : > { %v2623_v53 = vpop.f32.mrb[7].mxu0  ;;  %v948_v54 = vsel %vm397_vm2, %v944_v52, -inf }
 0x4e4   : > { %949 = vmax.xlane.f32.xlu1 %v948_v54 }
 0x4f5   : > { %1109 = vrot.lane.b32.xlu1 %v3250_v10, %s3008_s10 }
 0x571   : > { %v950_v55 = vpop.xlane.xlu1 %949 }
 0x572   : > { %v951_v56 = vsub.f32 %v944_v52, %v950_v55 }
 0x574   : > { %v952_v57 = vmul.f32 1.442695, %v951_v56 }
 0x575   : > { %v1110_v61 = vpop.permute.xlu1 %1109 }
 0x576   : > { %2808 = vpow2.f32 %v952_v57 }
 0x580   : > { %v2809_v58 = vpop.eup %2808 }
 0x581   : > { %2627 = vmatmul.mubr.msk.f32.vlgmr.msra.gmra.mrb[8].mxu1 %vm397_vm2, %v2809_v58  ;;  %v954_v60 = vsel %vm397_vm2, %v2809_v58, 0.0 }
 0x582   : > { %2635 = vmatpush3.xpose.msk.msra.mxu1 %vm397_vm2, %v1112_v59  ;;  %955 = vadd.xlane.f32.xlu1 %v954_v60 }
 0x583   : > { %2636 = vmatprep.mubr.msk.f32.mxu1 %vm2998_vm1, %v2997_v8  ;;  %2644 = vmatprep.subr.mxu1 %v2997_v8 }
 0x585   : > { %2637 = vmatmul.mubr.msk.f32.vlgmr.msra.gmra.mrb[10].mxu1 %vm397_vm2, %v1110_v61 }
 0x586   : > { %2646 = vmatprep.mubr.msk.f32.mxu1 %vm2998_vm1, %v2997_v8  ;;  %2645 = vmatpush3.msra.mxu1 %v3364_v21 }
 0x587   : > { %2654 = vmatprep.subr.mxu1 %v2997_v8 }
 0x593   : > { %1368 = vrot.lane.b32.xlu1 %v3248_v9, %s3000_s29 }
 0x597   : > { %1533 = vrot.lane.b32.xlu1 %v3248_v9, %s3001_s19 }
 0x60f   : > { %v956_v63 = vpop.xlane.xlu1 %955 }
 0x610   : > { %2810 = vrcp.f32 %v956_v63 }
 0x613   : > { %v1369_v14 = vpop.permute.xlu1 %1368 }
 0x61a   : > { %v2811_v0 = vpop.eup %2810 }
 0x654   : > { %v1029_v1 = vpop.f32.mrb[8].mxu1 }
 0x655   : > { %v1034_v2 = vmul.f32 %v2811_v0, %v1029_v1  ;;  %v2628_v3 = vpop.f32.mrb[9].mxu1 }
 0x657   : > { %2632 = vmatmul.mubr.msk.f32.vlgmr.msra.gmra.mrb[8].mxu0 %vm397_vm2, %v1034_v2 }
 0x658   : > { %v1183_v4 = vpop.f32.mrb[10].mxu1  ;;  %2641 = vmatprep.mubr.msk.f32.mxu0 %vm2998_vm1, %v2997_v8 }
 0x659   : > { %v2638_v5 = vpop.f32.mrb[11].mxu1  ;;  %v1187_v6 = vsel %vm397_vm2, %v1183_v4, -inf }
 0x65a   : > { %1188 = vmax.xlane.f32.xlu0 %v1187_v6 }
 0x670   : > { %1196 = vrot.lane.b32.xlu0 %v3250_v10, %s3009_s15  ;;  %v1534_v10 = vpop.permute.xlu1 %1533 }
 0x674   : > { %1531 = vrot.lane.b32.xlu0 %v3248_v9, %s2999_s27  ;;  %s2481_s27 = sshll.u32 %s3228_s30, 3 }
 0x6e7   : > { %v1189_v7 = vpop.xlane.xlu0 %1188 }
 0x6e8   : > { %v1190_v11 = vsub.f32 %v1183_v4, %v1189_v7 }
 0x6ea   : > { %v1191_v12 = vmul.f32 1.442695, %v1190_v11 }
 0x6eb   : > { %v1197_v13 = vpop.permute.xlu0 %1196 }
 0x6ec   : > { %2812 = vpow2.f32 %v1191_v12  ;;  %2640 = vmatpush3.msra.mxu0 %v1197_v13 }
 0x6ed   : > { %2649 = vmatprep.subr.mxu0 %v2997_v8 }
 0x6ef   : > { %v1532_v17 = vpop.permute.xlu0 %1531 }
 0x6f6   : > { %v2813_v15 = vpop.eup %2812 }
 0x6f7   : > { %2642 = vmatmul.mubr.msk.f32.vlgmr.msra.gmra.mrb[10].mxu0 %vm397_vm2, %v2813_v15  ;;  %v1193_v16 = vsel %vm397_vm2, %v2813_v15, 0.0  ;;  %v2500_v15 = vld [vmem:[%s3497_s3] ss:$0 sm:$0xff] }
 0x6f8   : > { %2650 = vmatpush3.xpose.msk.msra.mxu0 %vm397_vm2, %v1369_v14  ;;  %1194 = vadd.xlane.f32.xlu1 %v1193_v16 }
 0x6f9   : > { %2651 = vmatprep.mubr.msk.f32.mxu0 %vm2998_vm1, %v2997_v8  ;;  %2659 = vmatprep.subr.mxu0 %v2997_v8 }
 0x6fb   : > { %2652 = vmatmul.mubr.msk.f32.vlgmr.msra.gmra.mrb[12].mxu0 %vm397_vm2, %v3248_v9 }
 0x6fc   : > { %2660 = vmatpush3.xpose.msk.msra.mxu0 %vm397_vm2, %v1534_v10  ;;  %2661 = vmatprep.mubr.msk.f32.mxu0 %vm2998_vm1, %v2997_v8 }
 0x6fd   : > { %2669 = vmatprep.subr.mxu0 %v2997_v8 }
 0x6ff   : > { %2662 = vmatmul.mubr.msk.f32.vlgmr.msra.gmra.mrb[14].mxu0 %vm397_vm2, %v1532_v17 }
 0x700   : > { %2670 = vmatpush3.msra.mxu0 %v3293_v32  ;;  %2671 = vmatprep.mubr.msk.f32.mxu0 %vm2998_vm1, %v2997_v8 }
 0x701   : > { %2679 = vmatprep.subr.mxu0 %v2997_v8 }
 0x709   : > { %1453 = vrot.lane.b32.xlu1 %v3248_v9, %s3003_s16 }
 0x72a   : > { %v1104_v18 = vpop.f32.mrb[8].mxu0 }
 0x72b   : > { %v1108_v19 = vadd.f32 %v1104_v18, %v3313_v50  ;;  %v2633_v20 = vpop.f32.mrb[9].mxu0 }
 0x785   : > { %v1195_v22 = vpop.xlane.xlu1 %1194 }
 0x786   : > { %2814 = vrcp.f32 %v1195_v22 }
 0x789   : > { %v1454_v27 = vpop.permute.xlu1 %1453 }
 0x790   : > { %v2815_v23 = vpop.eup %2814 }
 0x7ca   : > { %v1268_v24 = vpop.f32.mrb[10].mxu0 }
 0x7cb   : > { %v1273_v25 = vmul.f32 %v2815_v23, %v1268_v24  ;;  %v2643_v26 = vpop.f32.mrb[11].mxu0 }
 0x7cd   : > { %2647 = vmatmul.mubr.msk.f32.vlgmr.msra.gmra.mrb[12].mxu1 %vm397_vm2, %v1273_v25 }
 0x7ce   : > { %2655 = vmatpush3.msra.mxu1 %v1454_v27  ;;  %v1440_v28 = vpop.f32.mrb[12].mxu0  ;;  %2656 = vmatprep.mubr.msk.f32.mxu1 %vm2998_vm1, %v2997_v8 }
 0x7cf   : > { %v2653_v29 = vpop.f32.mrb[13].mxu0  ;;  %v1444_v30 = vsel %vm397_vm2, %v1440_v28, -inf  ;;  %2664 = vmatprep.subr.mxu1 %v2997_v8 }
 0x7d0   : > { %1445 = vmax.xlane.f32.xlu0 %v1444_v30 }
 0x7d2   : > { %v1605_v31 = vpop.f32.mrb[14].mxu0 }
 0x7d3   : > { %v2663_v32 = vpop.f32.mrb[15].mxu0  ;;  %v1609_v34 = vsel %vm397_vm2, %v1605_v31, -inf }
 0x7d4   : > { %1610 = vmax.xlane.f32.xlu0 %v1609_v34 }
 0x7ea   : > { %1618 = vrot.lane.b32.xlu0 %v3248_v9, %s3002_s20 }
 0x7ee   : > { %1844 = vrot.lane.b32.xlu0 %v3248_v9, %s3004_s17  ;;  %s2520_s17 = sshll.u32 %s3068_s25, 7  ;;  %s3011_s25 = smov [#allocation8]  }
 0x7f2   : > { %1842 = vrot.lane.b32.xlu0 %v3248_v9, %s3005_s18 }
 0x85d   : > { %v1446_v35 = vpop.xlane.xlu0 %1445 }
 0x85e   : > { %v1447_v36 = vsub.f32 %v1440_v28, %v1446_v35 }
 0x860   : > { %v1448_v37 = vmul.f32 1.442695, %v1447_v36 }
 0x861   : > { %v1611_v38 = vpop.xlane.xlu0 %1610 }
 0x862   : > { %2816 = vpow2.f32 %v1448_v37  ;;  %v1612_v39 = vsub.f32 %v1605_v31, %v1611_v38 }
 0x864   : > { %v1613_v40 = vmul.f32 1.442695, %v1612_v39 }
 0x865   : > { %v1619_v42 = vpop.permute.xlu0 %1618 }
 0x866   : > { %2818 = vpow2.f32 %v1613_v40 }
 0x869   : > { %v1845_v49 = vpop.permute.xlu0 %1844 }
 0x86c   : > { %v2817_v41 = vpop.eup %2816 }
 0x86d   : > { %2657 = vmatmul.mubr.msk.f32.vlgmr.msra.gmra.mrb[14].mxu1 %vm397_vm2, %v2817_v41  ;;  %v1450_v43 = vsel %vm397_vm2, %v2817_v41, 0.0  ;;  %v1843_v50 = vpop.permute.xlu0 %1842 }
 0x86e   : > { %2665 = vmatpush3.msra.mxu1 %v1619_v42  ;;  %1451 = vadd.xlane.f32.xlu0 %v1450_v43 }
 0x86f   : > { %2666 = vmatprep.mubr.msk.f32.mxu1 %vm2998_vm1, %v2997_v8  ;;  %2674 = vmatprep.subr.mxu1 %v2997_v8 }
 0x870   : > { %v2819_v44 = vpop.eup %2818 }
 0x871   : > { %2667 = vmatmul.mubr.msk.f32.vlgmr.msra.gmra.mrb[16].mxu1 %vm397_vm2, %v2819_v44  ;;  %v1615_v45 = vsel %vm397_vm2, %v2819_v44, 0.0 }
 0x872   : > { %1616 = vadd.xlane.f32.xlu1 %v1615_v45  ;;  %2675 = vmatpush3.msra.mxu1 %v3296_v33 }
 0x873   : > { %2676 = vmatprep.mubr.msk.f32.mxu1 %vm2998_vm1, %v2997_v8  ;;  %2684 = vmatprep.subr.mxu1 %v2997_v8 }
 0x883   : > { %1929 = vrot.lane.b32.xlu1 %v3248_v9, %s3006_s26 }
 0x884   : > { %2083 = vrot.lane.b32.xlu0 %v3248_v9, %s3007_s13 }
 0x8a0   : > { %v1343_v46 = vpop.f32.mrb[12].mxu1 }
 0x8a1   : > { %v1347_v47 = vadd.f32 %v1343_v46, %v1108_v19  ;;  %v2648_v48 = vpop.f32.mrb[13].mxu1 }
 0x8a3   : > { %v1354_v16 = vadd.f32 %v2500_v15, %v1347_v47 }
 0x8fb   : > { %v1452_v51 = vpop.xlane.xlu0 %1451 }
 0x8fc   : > { %2820 = vrcp.f32 %v1452_v51 }
 0x8ff   : > { %v1617_v52 = vpop.xlane.xlu1 %1616  ;;  %v2084_v12 = vpop.permute.xlu0 %2083 }
 0x900   : > { %2822 = vrcp.f32 %v1617_v52 }
 0x903   : > { %v1930_v56 = vpop.permute.xlu1 %1929 }
 0x906   : > { %v2821_v33 = vpop.eup %2820 }
 0x90a   : > { %v2823_v57 = vpop.eup %2822 }
 0x940   : > { %v1525_v53 = vpop.f32.mrb[14].mxu1 }
 0x941   : > { %v1530_v54 = vmul.f32 %v2821_v33, %v1525_v53  ;;  %v2658_v55 = vpop.f32.mrb[15].mxu1 }
 0x943   : > { %2677 = vmatmul.mubr.msk.f32.vlgmr.msra.gmra.mrb[18].mxu1 %vm397_vm2, %v1530_v54 }
 0x944   : > { %2685 = vmatpush3.msra.mxu1 %v1930_v56  ;;  %v1690_v58 = vpop.f32.mrb[16].mxu1  ;;  %2686 = vmatprep.mubr.msk.f32.mxu1 %vm2998_vm1, %v2997_v8 }
 0x945   : > { %v1695_v59 = vmul.f32 %v2823_v57, %v1690_v58  ;;  %v2668_v60 = vpop.f32.mrb[17].mxu1  ;;  %2694 = vmatprep.subr.mxu1 %v2997_v8 }
 0x947   : > { %2672 = vmatmul.mubr.msk.f32.vlgmr.msra.gmra.mrb[16].mxu0 %vm397_vm2, %v1695_v59 }
 0x948   : > { %2680 = vmatpush3.xpose.msk.msra.mxu0 %vm397_vm2, %v1845_v49  ;;  %2681 = vmatprep.mubr.msk.f32.mxu0 %vm2998_vm1, %v2997_v8 }
 0x949   : > { %2689 = vmatprep.subr.mxu0 %v2997_v8 }
 0x94b   : > { %2682 = vmatmul.mubr.msk.f32.vlgmr.msra.gmra.mrb[18].mxu0 %vm397_vm2, %v1843_v50 }
 0x94c   : > { %2690 = vmatpush3.msra.mxu0 %v3331_v62  ;;  %2691 = vmatprep.mubr.msk.f32.mxu0 %vm2998_vm1, %v2997_v8 }
 0x94d   : > { %2699 = vmatprep.subr.mxu0 %v2997_v8 }
 0xa16   : > { %v1838_v61 = vpop.f32.mrb[18].mxu1 }
 0xa17   : > { %v2678_v63 = vpop.f32.mrb[19].mxu1 }
 0xa18   : > { %v2517_v63 = vld [vmem:[%s3498_s4] ss:$0 sm:$0xff] }
 0xa1a   : > { %v1765_v0 = vpop.f32.mrb[16].mxu0 }
 0xa1b   : > { %v1839_v1 = vadd.f32 %v1838_v61, %v1765_v0  ;;  %v2673_v2 = vpop.f32.mrb[17].mxu0 }
 0xa1e   : > { %v1916_v3 = vpop.f32.mrb[18].mxu0 }
 0xa1f   : > { %v2683_v4 = vpop.f32.mrb[19].mxu0  ;;  %v1920_v5 = vsel %vm397_vm2, %v1916_v3, -inf }
 0xa20   : > { %1921 = vmax.xlane.f32.xlu1 %v1920_v5 }
 0xa31   : > { %2081 = vrot.lane.b32.xlu1 %v3248_v9, %s3008_s10 }
 0xaad   : > { %v1922_v6 = vpop.xlane.xlu1 %1921 }
 0xaae   : > { %v1923_v62 = vsub.f32 %v1916_v3, %v1922_v6 }
 0xab0   : > { %v1924_v7 = vmul.f32 1.442695, %v1923_v62 }
 0xab1   : > { %v2082_v14 = vpop.permute.xlu1 %2081 }
 0xab2   : > { %2824 = vpow2.f32 %v1924_v7 }
 0xabc   : > { %v2825_v11 = vpop.eup %2824 }
 0xabd   : > { %2687 = vmatmul.mubr.msk.f32.vlgmr.msra.gmra.mrb[20].mxu1 %vm397_vm2, %v2825_v11  ;;  %v1926_v13 = vsel %vm397_vm2, %v2825_v11, 0.0 }
 0xabe   : > { %2695 = vmatpush3.xpose.msk.msra.mxu1 %vm397_vm2, %v2084_v12  ;;  %1927 = vadd.xlane.f32.xlu1 %v1926_v13 }
 0xabf   : > { %2696 = vmatprep.mubr.msk.f32.mxu1 %vm2998_vm1, %v2997_v8  ;;  %2704 = vmatprep.subr.mxu1 %v2997_v8 }
 0xac1   : > { %2697 = vmatmul.mubr.msk.f32.vlgmr.msra.gmra.mrb[22].mxu1 %vm397_vm2, %v2082_v14 }
 0xac2   : > { %2705 = vmatpush3.msra.mxu1 %v3364_v21  ;;  %2706 = vmatprep.mubr.msk.f32.mxu1 %vm2998_vm1, %v2997_v8 }
 0xacf   : > { %2168 = vrot.lane.b32.xlu1 %v3248_v9, %s3009_s15  ;;  %s3449_s15 = scalar_lea.hbm %s3500_s6, %s2520_s17 }
 0xad3   : > { %1356 = vrot.lane.b32.xlu1 %v1354_v16, %s3005_s18 }
 0xb4b   : > { %v1928_v10 = vpop.xlane.xlu1 %1927 }
 0xb4c   : > { %2826 = vrcp.f32 %v1928_v10 }
 0xb4f   : > { %v2169_v21 = vpop.permute.xlu1 %2168 }
 0xb53   : > { %v1357_v41 = vpop.permute.xlu1 %1356 }
 0xb54   : > { %v1359_v44 = vmax.f32 %v1354_v16, %v1357_v41 }
 0xb56   : > { %v2827_v17 = vpop.eup %2826  ;;  %v1361_v46 = vrot.slane %v1359_v44, 4 }
 0xb90   : > { %v2001_v18 = vpop.f32.mrb[20].mxu1 }
 0xb91   : > { %v2006_v19 = vmul.f32 %v2827_v17, %v2001_v18  ;;  %v2688_v20 = vpop.f32.mrb[21].mxu1 }
 0xb93   : > { %2692 = vmatmul.mubr.msk.f32.vlgmr.msra.gmra.mrb[20].mxu0 %vm397_vm2, %v2006_v19 }
 0xb94   : > { %2700 = vmatpush3.msra.mxu0 %v2169_v21  ;;  %v2155_v22 = vpop.f32.mrb[22].mxu1  ;;  %2701 = vmatprep.mubr.msk.f32.mxu0 %vm2998_vm1, %v2997_v8 }
 0xb95   : > { %v2698_v23 = vpop.f32.mrb[23].mxu1  ;;  %v2159_v9 = vsel %vm397_vm2, %v2155_v22, -inf }
 0xb96   : > { %2160 = vmax.xlane.f32.xlu0 %v2159_v9 }
 0xc23   : > { %v2161_v24 = vpop.xlane.xlu0 %2160 }
 0xc24   : > { %v2162_v25 = vsub.f32 %v2155_v22, %v2161_v24 }
 0xc26   : > { %v2163_v26 = vmul.f32 1.442695, %v2162_v25 }
 0xc28   : > { %2828 = vpow2.f32 %v2163_v26 }
 0xc32   : > { %v2829_v27 = vpop.eup %2828 }
 0xc33   : > { %2702 = vmatmul.mubr.msk.f32.vlgmr.msra.gmra.mrb[22].mxu0 %vm397_vm2, %v2829_v27  ;;  %v2165_v28 = vsel %vm397_vm2, %v2829_v27, 0.0 }
 0xc34   : > { %2166 = vadd.xlane.f32.xlu0 %v2165_v28 }
 0xc66   : > { %v2076_v29 = vpop.f32.mrb[20].mxu0 }
 0xc67   : > { %v2080_v30 = vadd.f32 %v2076_v29, %v1839_v1  ;;  %v2693_v31 = vpop.f32.mrb[21].mxu0  ;;  %v2518_v1 = vld [vmem:[%s3499_s5] ss:$0 sm:$0xff] }
 0xcc1   : > { %v2167_v32 = vpop.xlane.xlu0 %2166 }
 0xcc2   : > { %2830 = vrcp.f32 %v2167_v32 }
 0xccc   : > { %v2831_v8 = vpop.eup %2830 }
 0xd06   : > { %v2240_v34 = vpop.f32.mrb[22].mxu0 }
 0xd07   : > { %v2245_v35 = vmul.f32 %v2831_v8, %v2240_v34  ;;  %v2703_v36 = vpop.f32.mrb[23].mxu0 }
 0xd09   : > { %2707 = vmatmul.mubr.msk.f32.vlgmr.msra.gmra.mrb[24].mxu1 %vm397_vm2, %v2245_v35 }
 0xddc   : > { %v2315_v37 = vpop.f32.mrb[24].mxu1 }
 0xddd   : > { %v2319_v38 = vadd.f32 %v2315_v37, %v2080_v30  ;;  %v2708_v39 = vpop.f32.mrb[25].mxu1 }
 0xddf   : > { %v2320_v40 = vadd.f32 %v2500_v15, %v2319_v38 }
 0xde1   : > { %2322 = vrot.lane.b32.xlu0 %v2320_v40, %s3005_s18  ;;  %s298_s18 = scalar_lea.vmem [#allocation8], %s2481_s27 }
 0xde2   : > { %s2380_s26 = sshll.u32 %s298_s18, 4  ;;  %s3451_s26 = int_to_ptr.vmem [resolvable:$true] %s2380_s26 }
 0xde3   : > { %s2920_s7 = scalar_lea.vmem %s3451_s26, 128 }
 0xde4   : > { %p2921_p8 = scmp.ne.s32.totalorder %s3451_s26, %s2920_s7 }
 0xde6   : > { %p2922_p2 = pnand %p2921_p8, %p3514_p0 }
 0xde8   : > { %p2923_p3 = pneg %p2922_p2 }
 0xe53   : > { %v2323_v42 = vpop.permute.xlu0 %2322 }
 0xe54   : > { %v2325_v43 = vmax.f32 %v2320_v40, %v2323_v42 }
 0xe56   : > { %v2327_v45 = vrot.slane %v2325_v43, 4 }
 0xe58   : > { %2328 = vrot.lane.b32.xlu1 %v2327_v45, %s3010_s12 }
 0xe5c   : > { %1362 = vrot.lane.b32.xlu1 %v1361_v46, %s3010_s12  ;;  %s2924_s12 = sshll.u32 %s3011_s25, 4  ;;  %s2925_s12 = int_to_ptr.vmem [resolvable:$false] %s2924_s12 }
 0xe5d   : > { %s2926_s27 = scalar_lea.vmem %s2925_s12, 256  ;;  %p2927_p7 = scmp.lt.s32.totalorder %s3451_s26, %s2925_s12 }
 0xe5e   : > { %p2928_p9 = scmp.lt.s32.totalorder %s2926_s27, %s2920_s7 }
 0xe60   : > { %p2929_p12 = por %p2928_p9, %p2927_p7 }
 0xe62   : > { %p2930_p1 = pnand %p2929_p12, %p2923_p3 }
 0xeca   : > { %v2329_v47 = vpop.permute.xlu1 %2328 }
 0xecb   : > { %v2331_v48 = vsel %vm1365_vm3, %v2325_v43, %v2329_v47 }
 0xecc   : > { %v2333_v49 = vrot.slane %v2331_v48, 4 }
 0xece   : > { %v1363_v50 = vpop.permute.xlu1 %1362 }
 0xecf   : > { %v1366_v51 = vsel %vm1365_vm3, %v1359_v44, %v1363_v50 }
 0xed0   : > { %v2336_v52 = vsel %vm2335_vm4, %v1366_v51, %v2333_v49 }
 0xed1   : > { %v2337_v33 = vsel %vm312_vm0, %v2336_v52, 0.0 }
 0xed2   : > { %2338 = vadd.xlane.f32.xlu0 %v2337_v33 }
 0xf5f   : > { %v2339_v53 = vpop.xlane.xlu0 %2338 }
 0xf60   : > { %v2341_v54 = vmul.f32 0.03125, %v2339_v53 }
 0xf62   : > { %v2342_v55 = vsub.f32 %v2336_v52, %v2341_v54 }
 0xf64   : > { %v2343_v56 = vmul.f32 %v2342_v55, %v2342_v55 }
 0xf66   : > { %v2344_v57 = vsel %vm312_vm0, %v2343_v56, 0.0 }
 0xf67   : > { %2345 = vadd.xlane.f32.xlu1 %v2344_v57 }
 0xff4   : > { %v2346_v58 = vpop.xlane.xlu1 %2345 }
 0xff5   : > { %v2347_v59 = vmul.f32 0.03125, %v2346_v58 }
 0xff7   : > { %v2348_v60 = vadd.f32 1e-05, %v2347_v59 }
 0xff9   : > { %2832 = vrsqrt.f32 %v2348_v60 }
0x1003   : > { %v2833_v61 = vpop.eup %2832 }
0x1004   : > { %v2350_v0 = vmul.f32 %v2833_v61, %v2342_v55 }
0x1006   : > { %v2357_v2 = vmul.f32 %v2517_v63, %v2350_v0 }
0x1008   : > { %v2364_v3 = vadd.f32 %v2518_v1, %v2357_v2 }
0x100a   : > { %2365 = vst.msk [vmem:[%s298_s18] sm:$0xff] %vm312_vm0, %v2364_v3 }
0x100b   : > { %2933 = shalt.err (!%p2930_p1)
}
0x100c   : > { %s2934_s30 = scalar_lea.hbm %s3449_s15, 128  ;;  %s2938_s20 = scalar_lea.hbm %s3500_s6, 256 }
0x100d   : > { %p2935_p13 = scmp.ne.s32.totalorder %s3449_s15, %s2934_s30  ;;  %p2939_p4 = scmp.lt.u32.totalorder %s3449_s15, %s3500_s6 }
0x100e   : > { %p2940_p5 = scmp.lt.u32.totalorder %s2938_s20, %s2934_s30  ;;  %p2942_p8 = scmp.lt.u32.totalorder %s2934_s30, %s3449_s15 }
0x100f   : > { %p2936_p6 = pnand %p2935_p13, %p3514_p0 }
0x1010   : > { %p2941_p11 = por %p2940_p5, %p2939_p4 }
0x1011   : > { %p2937_p10 = pneg %p2936_p6 }
0x1012   : > { %p2943_p2 = por %p2942_p8, %p2941_p11 }
0x1014   : > { %p2944_p3 = pnand %p2943_p2, %p2937_p10 }
0x1016   : > { %2947 = shalt.err (!%p2944_p3)
}
0x1017   : > { %2727 = dma.vmem_to_hbm [thread:$0]  (%p3514_p0), %s3451_s26, 128, %s3449_s15, %s2367_s14  }
0x1018 PF: > { %s2392_s18 = sand.u32 1, %s2978_s21   ;;  %p3515_p7 = scmp.ne.s32.totalorder %s3505_s28, 0 }
0x1019   : > { %p3516_p9 = scmp.ge.s32.totalorder %s2990_s24, 2  ;;  %s2393_s13 = scalar_lea.sflag [#allocation4], %s2392_s18 }
0x101b   : > { %p2741_p12 = pnand %p3516_p9, %p3515_p7 }
0x101d   : > { %2973 = dma.done.wait (!%p2741_p12), %s2393_s13, 128  }
0x101e   : > { %2975 = vsyncadd (!%p2741_p12), %s2393_s13, 4294967168  ;;  %p20_p1 = scmp.ge.s32.totalorder %s3163_s8, 4   ;;  %s3517_s21 = smov %s2982_s22 }
0x101f   : > { %s3518_s22 = smov %s2986_s23  ;;  %s3519_s23 = smov %s3179_s11 }
0x1020   : > { %s3520_s24 = smov %s3163_s8  ;;  %22 = sbr.rel (!%p20_p1) target bundleno = 6 (0x6), region = 97 }
0x1027   :  { %2398 = vsyncpa [#allocation3], 1 }
0x1028   :  { %2400 = vsyncpa [#allocation3 + $0x1], 1 }
0x1029   :  { %2401 = vsyncpa [#allocation6], 1 }
0x102a   :  { %2402 = vsyncpa [#allocation4], 1 }
0x102b   :  { %2404 = vsyncpa [#allocation4 + $0x1], 1 }

</bundles_post_ra>
